<compile_context>
chip_gen: v7x
topology: tpu7x:2x2x1
jax: 0.10.0
libtpu: 0.0.40
codegen_flags: <defaults>
</compile_context>

<pallas_src>
import functools

import jax
import jax.numpy as jnp
import numpy as np
from jax.experimental import pallas as pl
from jax.experimental.pallas import tpu as pltpu


def _transition_kernel(x_ref, scale_ref, bias_ref, w_ref, o_ref, *, presum_dw):
    # x_ref:     (thp, 2, Wp, 2*Cin) bf16 -- dh tap on axis 1, dw folded into channels
    # scale_ref: (1, 2*Cin) f32           -- BN fold, 0.25 avg-pool factor included
    # bias_ref:  (1, 2*Cin) f32
    # w_ref:     (K, Cout_pad) bf16, K = Cin (presum_dw) or 2*Cin
    # o_ref:     (thp, Wp, Cout_pad) bf16
    thp, _, wp, c2 = x_ref.shape
    cout = o_ref.shape[-1]
    s = thp * wp

    scale = scale_ref[...]
    bias = bias_ref[...]

    x = x_ref[...]                                  # one VMEM block, dh split below
    # BN + ReLU in f32 on the VPU (v5e has no bf16 VALU).  The 0.25 pool factor is
    # already folded into scale/bias (positive scale commutes with ReLU), and the 1x1
    # conv is linear, so summing the ReLU'd taps before a single matmul is exact.
    # NOTE: the (thp, Wp, c2) -> (s, c2) reshape is layout-free when Wp % 8 == 0;
    # for odd pooled widths prefer a host-side flatten or a 3-D dot_general.
    x0 = x[:, 0].reshape(s, c2).astype(jnp.float32)
    x1 = x[:, 1].reshape(s, c2).astype(jnp.float32)
    y = (jnp.maximum(x0 * scale + bias, 0.0) +
         jnp.maximum(x1 * scale + bias, 0.0))
    if presum_dw:
        cin = c2 // 2
        y = y[:, :cin] + y[:, cin:]                 # lane-aligned split (Cin % 128 == 0)

    out = jnp.dot(y.astype(jnp.bfloat16), w_ref[...],
                  preferred_element_type=jnp.float32)
    o_ref[...] = out.reshape(thp, wp, cout).astype(o_ref.dtype)


def _vmem_capacity_bytes():
    try:
        return int(pltpu.get_tpu_info().vmem_capacity_bytes)
    except Exception:
        return 64 * 1024 * 1024                     # v7x per-core VMEM (smallest target)


def _pick_spatial_tile(N, Hp, Wp, Cin, K, Cout_pad, budget_bytes):
    """Rows of pooled output per grid step, sized against an honest per-step VMEM
    footprint: double-buffered bf16 in/out blocks, single-buffered weight/scale/bias,
    and the in-kernel temporaries (f32 upcast, ReLU'd taps, bf16 lhs, f32 acc)."""
    c2 = 2 * Cin

    def footprint(thp):
        s = thp * Wp
        inp = 2 * (thp * 2 * Wp * c2 * 2)           # 2x-buffered bf16 input block
        outp = 2 * (s * Cout_pad * 2)               # 2x-buffered bf16 output block
        wgt = K * Cout_pad * 2 + 2 * (2 * c2 * 4)   # single-buffered weight + scale/bias
        temps = (thp * 2 * Wp * c2 * 4              # f32 upcast of the block
                 + 2 * s * c2 * 4                   # ReLU'd taps / tap sum
                 + s * K * 2                        # bf16 matmul lhs
                 + s * Cout_pad * 4)                # f32 accumulator before the store
        return inp + outp + wgt + temps

    thp = max(1, Hp)
    while thp > 1 and footprint(thp) > budget_bytes:
        thp = -(-thp // 2)                          # ceil halve (pl.cdiv grid, no divisor search)

    # Keep enough grid steps that both v7x TensorCores (and the pipeline) get work,
    # but never shrink a step's input transfer below ~256 KiB (short DMAs dominate).
    min_rows = max(1, (256 * 1024) // max(1, 2 * Wp * c2 * 2))
    min_steps = 8
    while N * (-(-Hp // thp)) < min_steps and thp > min_rows:
        thp = max(min_rows, -(-thp // 2))
    return thp, footprint(thp)


def transition_layer(x_nchw, gamma, beta, conv_w, eps=1e-5):
    """Forward of: BatchNorm2d (training-mode batch stats) -> ReLU -> Conv2d 1x1
    (no bias) -> AvgPool2d(2, 2).  x_nchw: (N, Cin, H, W); conv_w: (Cout, Cin, 1, 1)."""
    N, Cin, H, W = x_nchw.shape
    Cout = conv_w.shape[0]
    Hp, Wp = H // 2, W // 2
    c2 = 2 * Cin
    Cout_pad = ((Cout + 127) // 128) * 128          # lane-dense (unmasked) output stores

    # ---- single HBM layout pass: NCHW f32 -> NHWC bf16 (halves the kernel's read
    # ---- stream).  Batch statistics come from the bf16 tensor via one fused
    # ---- sum / sum-of-squares reduction (no extra full-f32 pass over x).
    x_nhwc = jnp.transpose(x_nchw.astype(jnp.float32), (0, 2, 3, 1)).astype(jnp.bfloat16)
    xf = x_nhwc.astype(jnp.float32)                 # fuses into the reductions below
    cnt = N * H * W
    ssum = jnp.sum(xf, axis=(0, 1, 2))
    ssq = jnp.sum(xf * xf, axis=(0, 1, 2))
    mean = ssum / cnt
    var = jnp.maximum(ssq / cnt - mean * mean, 0.0)  # biased variance (training-mode BN)

    inv = gamma.astype(jnp.float32) / jnp.sqrt(var + eps)
    scale = 0.25 * inv                               # 2x2 avg-pool folded in (0.25 > 0
    bias = 0.25 * (beta.astype(jnp.float32) - mean * inv)  # commutes with ReLU)
    scale2 = jnp.tile(scale, 2).reshape(1, c2)       # matches [dw=0 chans | dw=1 chans]
    bias2 = jnp.tile(bias, 2).reshape(1, c2)

    # ---- 1x1 conv weight.  If Cin is a lane-aligned >=128 the kernel pre-sums the dw
    # ---- taps too (K = Cin, half the weight VMEM, 4x fewer MXU MACs); otherwise dw
    # ---- stays folded into K = 2*Cin to keep a useful MXU contraction depth.
    presum_dw = (Cin >= 128) and (Cin % 128 == 0)
    w2d = conv_w[:, :, 0, 0].T.astype(jnp.float32)               # (Cin, Cout)
    w2d = jnp.pad(w2d, ((0, 0), (0, Cout_pad - Cout)))           # zero-padded lanes
    if presum_dw:
        w_mat = w2d.astype(jnp.bfloat16)                         # (Cin, Cout_pad)
    else:
        w_mat = jnp.tile(w2d, (2, 1)).astype(jnp.bfloat16)       # (2*Cin, Cout_pad)
    K = w_mat.shape[0]

    # ---- the 2x2 pool-tap split is a free metadata reshape of the NHWC tensor
    x6 = x_nhwc.reshape(N, Hp, 2, Wp, c2)            # (n, h', dh, w', dw*Cin + c)

    cap = _vmem_capacity_bytes()                     # per-core VMEM (64 MiB v7x, 128 MiB v5e/v6e)
    budget = max(8 << 20, int(cap * 0.40))
    thp, fp = _pick_spatial_tile(N, Hp, Wp, Cin, K, Cout_pad, budget)
    grid = (N, pl.cdiv(Hp, thp))
    vmem_limit = int(min(cap * 3 // 4, max(int(fp * 1.5), 32 << 20)))

    flops = 2 * N * Hp * Wp * K * Cout_pad + 10 * N * H * W * Cin
    bytes_accessed = (x6.size * 2 + N * Hp * Wp * Cout_pad * 2
                      + K * Cout_pad * 2 + 4 * c2 * 4)

    invariant = pl.Buffered(1)                       # grid-invariant operands: no double buffer
    out = pl.pallas_call(
        functools.partial(_transition_kernel, presum_dw=presum_dw),
        out_shape=jax.ShapeDtypeStruct((N, Hp, Wp, Cout_pad), jnp.bfloat16),
        grid=grid,
        in_specs=[
            pl.BlockSpec((None, thp, 2, Wp, c2), lambda n, s: (n, s, 0, 0, 0)),
            pl.BlockSpec((1, c2), lambda n, s: (0, 0), pipeline_mode=invariant),
            pl.BlockSpec((1, c2), lambda n, s: (0, 0), pipeline_mode=invariant),
            pl.BlockSpec((K, Cout_pad), lambda n, s: (0, 0), pipeline_mode=invariant),
        ],
        out_specs=pl.BlockSpec((None, thp, Wp, Cout_pad), lambda n, s: (n, s, 0, 0)),
        compiler_params=pltpu.CompilerParams(
            dimension_semantics=("parallel", "parallel"),
            vmem_limit_bytes=vmem_limit),
        cost_estimate=pl.CostEstimate(flops=int(flops), transcendentals=0,
                                      bytes_accessed=int(bytes_accessed)),
    )(x6, scale2, bias2, w_mat)

    # ---- glue back to the module contract (NCHW, f32): drop the lane padding and
    # ---- transpose; XLA fuses slice + transpose + convert into one pass over bf16.
    return jnp.transpose(out[..., :Cout], (0, 3, 1, 2)).astype(jnp.float32)


def _reference(x_nchw, gamma, beta, conv_w, eps=1e-5):
    mean = jnp.mean(x_nchw, axis=(0, 2, 3), keepdims=True)
    var = jnp.var(x_nchw, axis=(0, 2, 3), keepdims=True)
    y = (x_nchw - mean) / jnp.sqrt(var + eps)
    y = y * gamma[None, :, None, None] + beta[None, :, None, None]
    y = jnp.maximum(y, 0.0)
    z = jnp.einsum("nchw,oc->nohw", y, conv_w[:, :, 0, 0])
    n, co, h, w = z.shape
    return z.reshape(n, co, h // 2, 2, w // 2, 2).mean(axis=(3, 5))


if __name__ == "__main__":
    N, Cin, Cout, H, W = 2, 4, 8, 16, 16
    key = jax.random.PRNGKey(0)
    kx, kg, kb, kw = jax.random.split(key, 4)

    x = jax.random.normal(kx, (N, Cin, H, W), dtype=jnp.float32)
    gamma = jax.random.normal(kg, (Cin,), dtype=jnp.float32) * 0.1 + 1.0
    beta = jax.random.normal(kb, (Cin,), dtype=jnp.float32) * 0.1
    conv_w = jax.random.normal(kw, (Cout, Cin, 1, 1), dtype=jnp.float32) * 0.1

    fn = jax.jit(transition_layer)
    out = jax.block_until_ready(fn(x, gamma, beta, conv_w))
    ref = jax.block_until_ready(_reference(x, gamma, beta, conv_w))

    # bf16 activations / bf16 MXU (f32 accumulate) / bf16 stores -> loosened tolerance
    # vs the pure-f32 reference.
    np.testing.assert_allclose(np.asarray(out), np.asarray(ref),
                               rtol=3e-2, atol=3e-2)
    print("KERNEL_OK")
</pallas_src>

<mosaic_0001>
module attributes {stable_mosaic.version = 11 : i64} {
  func.func @_transition_kernel(%arg0: i32, %arg1: i32, %arg2: memref<1x8x2x8x8xbf16, #tpu.memory_space<vmem>>, %arg3: memref<1x8xf32, #tpu.memory_space<vmem>>, %arg4: memref<1x8xf32, #tpu.memory_space<vmem>>, %arg5: memref<8x128xbf16, #tpu.memory_space<vmem>>, %arg6: memref<1x8x8x128xbf16, #tpu.memory_space<vmem>>) attributes {dimension_semantics = [#tpu.dimension_semantics<parallel>, #tpu.dimension_semantics<parallel>], iteration_bounds = array<i64: 2, 1>, scalar_prefetch = 0 : i64, scratch_operands = 0 : i64, tpu.core_type = #tpu.core_type<tc>, window_params = [{transform_indices = @transform_0, window_bounds = array<i64: 1, 8, 2, 8, 8>}, {pipeline_mode = #tpu.pipeline_mode<synchronous>, transform_indices = @transform_1, window_bounds = array<i64: 1, 8>}, {pipeline_mode = #tpu.pipeline_mode<synchronous>, transform_indices = @transform_2, window_bounds = array<i64: 1, 8>}, {pipeline_mode = #tpu.pipeline_mode<synchronous>, transform_indices = @transform_3, window_bounds = array<i64: 8, 128>}, {transform_indices = @transform_4, window_bounds = array<i64: 1, 8, 8, 128>}]} {
    %c0 = arith.constant 0 : index
    %c0_0 = arith.constant 0 : index
    %0 = vector.load %arg3[%c0, %c0_0] : memref<1x8xf32, #tpu.memory_space<vmem>>, vector<1x8xf32>
    %c0_1 = arith.constant 0 : index
    %c0_2 = arith.constant 0 : index
    %1 = vector.load %arg4[%c0_1, %c0_2] : memref<1x8xf32, #tpu.memory_space<vmem>>, vector<1x8xf32>
    %c0_3 = arith.constant 0 : index
    %c0_4 = arith.constant 0 : index
    %c0_5 = arith.constant 0 : index
    %c0_6 = arith.constant 0 : index
    %c0_7 = arith.constant 0 : index
    %2 = vector.load %arg2[%c0_3, %c0_4, %c0_5, %c0_6, %c0_7] : memref<1x8x2x8x8xbf16, #tpu.memory_space<vmem>>, vector<1x8x2x8x8xbf16>
    %3 = vector.shape_cast %2 : vector<1x8x2x8x8xbf16> to vector<8x2x8x8xbf16>
    %4 = vector.extract_strided_slice %3 {offsets = [0, 0, 0, 0], sizes = [8, 1, 8, 8], strides = [1, 1, 1, 1]} : vector<8x2x8x8xbf16> to vector<8x1x8x8xbf16>
    %5 = vector.shape_cast %4 : vector<8x1x8x8xbf16> to vector<8x8x8xbf16>
    %6 = vector.shape_cast %5 : vector<8x8x8xbf16> to vector<64x8xbf16>
    %7 = arith.extf %6 : vector<64x8xbf16> to vector<64x8xf32>
    %8 = vector.extract_strided_slice %3 {offsets = [0, 1, 0, 0], sizes = [8, 1, 8, 8], strides = [1, 1, 1, 1]} : vector<8x2x8x8xbf16> to vector<8x1x8x8xbf16>
    %9 = vector.shape_cast %8 : vector<8x1x8x8xbf16> to vector<8x8x8xbf16>
    %10 = vector.shape_cast %9 : vector<8x8x8xbf16> to vector<64x8xbf16>
    %11 = arith.extf %10 : vector<64x8xbf16> to vector<64x8xf32>
    %12 = vector.broadcast %0 : vector<1x8xf32> to vector<64x8xf32>
    %13 = arith.mulf %7, %12 : vector<64x8xf32>
    %14 = vector.broadcast %1 : vector<1x8xf32> to vector<64x8xf32>
    %15 = arith.addf %13, %14 : vector<64x8xf32>
    %cst = arith.constant 0.000000e+00 : f32
    %16 = vector.broadcast %cst : f32 to vector<64x8xf32>
    %17 = arith.maximumf %15, %16 : vector<64x8xf32>
    %18 = vector.broadcast %0 : vector<1x8xf32> to vector<64x8xf32>
    %19 = arith.mulf %11, %18 : vector<64x8xf32>
    %20 = vector.broadcast %1 : vector<1x8xf32> to vector<64x8xf32>
    %21 = arith.addf %19, %20 : vector<64x8xf32>
    %cst_8 = arith.constant 0.000000e+00 : f32
    %22 = vector.broadcast %cst_8 : f32 to vector<64x8xf32>
    %23 = arith.maximumf %21, %22 : vector<64x8xf32>
    %24 = arith.addf %17, %23 : vector<64x8xf32>
    %25 = arith.truncf %24 : vector<64x8xf32> to vector<64x8xbf16>
    %c0_9 = arith.constant 0 : index
    %c0_10 = arith.constant 0 : index
    %26 = vector.load %arg5[%c0_9, %c0_10] : memref<8x128xbf16, #tpu.memory_space<vmem>>, vector<8x128xbf16>
    %cst_11 = arith.constant dense<0.000000e+00> : vector<64x128xf32>
    %27 = tpu.matmul %25, %26, %cst_11 {dimension_numbers = #tpu.dot_dimension_numbers<[1], [0], [0], [1], [0, 0, 1, 1], [], []>} : vector<64x8xbf16>, vector<8x128xbf16>, vector<64x128xf32> -> vector<64x128xf32>
    %28 = vector.shape_cast %27 : vector<64x128xf32> to vector<8x8x128xf32>
    %29 = arith.truncf %28 : vector<8x8x128xf32> to vector<8x8x128xbf16>
    %c0_12 = arith.constant 0 : index
    %c0_13 = arith.constant 0 : index
    %c0_14 = arith.constant 0 : index
    %c0_15 = arith.constant 0 : index
    %30 = vector.load %arg6[%c0_12, %c0_13, %c0_14, %c0_15] : memref<1x8x8x128xbf16, #tpu.memory_space<vmem>>, vector<1x8x8x128xbf16>
    %31 = vector.shape_cast %30 : vector<1x8x8x128xbf16> to vector<8x8x128xbf16>
    %32 = vector.shape_cast %29 : vector<8x8x128xbf16> to vector<1x8x8x128xbf16>
    tpu.vector_store %arg6[%c0_12, %c0_13, %c0_14, %c0_15], %32 {strides = array<i32>} : memref<1x8x8x128xbf16, #tpu.memory_space<vmem>>, vector<1x8x8x128xbf16>,
    return
  }
  func.func @transform_0(%arg0: i32, %arg1: i32) -> (i32, i32, i32, i32, i32) {
    %c0_i32 = arith.constant 0 : i32
    %c0_i32_0 = arith.constant 0 : i32
    %c0_i32_1 = arith.constant 0 : i32
    %c0_i32_2 = arith.constant 0 : i32
    return %arg0, %arg1, %c0_i32, %c0_i32_0, %c0_i32_1 : i32, i32, i32, i32, i32
  }
  func.func @transform_1(%arg0: i32, %arg1: i32) -> (i32, i32) {
    %c0_i32 = arith.constant 0 : i32
    %c0_i32_0 = arith.constant 0 : i32
    %c0_i32_1 = arith.constant 0 : i32
    return %c0_i32, %c0_i32_0 : i32, i32
  }
  func.func @transform_2(%arg0: i32, %arg1: i32) -> (i32, i32) {
    %c0_i32 = arith.constant 0 : i32
    %c0_i32_0 = arith.constant 0 : i32
    %c0_i32_1 = arith.constant 0 : i32
    return %c0_i32, %c0_i32_0 : i32, i32
  }
  func.func @transform_3(%arg0: i32, %arg1: i32) -> (i32, i32) {
    %c0_i32 = arith.constant 0 : i32
    %c0_i32_0 = arith.constant 0 : i32
    %c0_i32_1 = arith.constant 0 : i32
    return %c0_i32, %c0_i32_0 : i32, i32
  }
  func.func @transform_4(%arg0: i32, %arg1: i32) -> (i32, i32, i32, i32) {
    %c0_i32 = arith.constant 0 : i32
    %c0_i32_0 = arith.constant 0 : i32
    %c0_i32_1 = arith.constant 0 : i32
    return %arg0, %arg1, %c0_i32, %c0_i32_0 : i32, i32, i32, i32
  }
}

</mosaic_0001>

<bundles_post_ra>
// kernel: tile.18
= control target key start
LH: loop header
LB: loop body
LE: loop exit
PB: predicated region body
PF: predicated region fallthrough
CT: control target
= control target key end

     0   :  { %s22_s0 = inlined_call_operand.vmem [shape: f32[4], index: 0, kind: input, shape index: {}]   ;;  %s23_s1 = inlined_call_operand.vmem [shape: f32[2,4], index: 1, kind: output, shape index: {}]  }
   0x1   :  { %v4_v0 = vld [vmem:[%s22_s0] ss:$0 sm:$0xff] }
   0x2   :  { %5 = vst [vmem:[%s23_s1] sm:$0x3] %v4_v0 }

// kernel: tile.19
= control target key start
LH: loop header
LB: loop body
LE: loop exit
PB: predicated region body
PF: predicated region fallthrough
CT: control target
= control target key end

     0   :  { %vm7_vm0 = vcmask 31744   ;;  %vm13_vm1 = vcmask 64544   ;;  %s39_s0 = inlined_call_operand.vmem [shape: f32[2,4], index: 0, kind: input, shape index: {}]   ;;  %s40_s1 = inlined_call_operand.vmem [shape: f32[1,8], index: 1, kind: output, shape index: {}]  }
   0x1   :  { %v4_v0 = vld [vmem:[%s39_s0] sm:$0x3]  ;;  %s22_s0 = smov 4  }
   0x2   :  { %5 = vst [vmem:[#allocation1] sm:$0x3] %v4_v0 }
   0x9   :  { %v10_v1 = vld [vmem:[#allocation1 + $0x1] sm:$0x1]   ;;  %v6_v2 = vld [vmem:[#allocation1] sm:$0x1]  }
   0xa   :  { %11 = vrot.lane.b32.xlu0 %v10_v1, %s22_s0  ;;  %8 = vst.msk [vmem:[#allocation0] sm:$0x1] %vm7_vm0, %v6_v2  }
  0x7c   :  { %v12_v3 = vpop.permute.xlu0 %11  }
  0x7d   :  { %14 = vst.msk [vmem:[#allocation0] sm:$0x1] %vm13_vm1, %v12_v3  }
  0x84   :  { %v18_v4 = vld [vmem:[#allocation0] sm:$0x1] }
  0x85   :  { %20 = vst [vmem:[%s40_s1] sm:$0x1] %v18_v4 }

// kernel: transition_layer.1
= control target key start
LH: loop header
LB: loop body
LE: loop exit
PB: predicated region body
PF: predicated region fallthrough
CT: control target
= control target key end

     0   :  { %s709_s15 = smov 0   ;;  %s711_s16 = smov 0   ;;  %s805_s0 = inlined_call_operand.vmem [shape: bf16[2,8,2,8,8], index: 0, kind: input, shape index: {}]   ;;  %s806_s1 = inlined_call_operand.vmem [shape: f32[1,8], index: 1, kind: input, shape index: {}]   ;;  %s807_s2 = inlined_call_operand.vmem [shape: f32[1,8], index: 2, kind: input, shape index: {}]   ;;  %s808_s3 = inlined_call_operand.vmem [shape: bf16[8,128], index: 3, kind: input, shape index: {}]   ;;  %s809_s4 = inlined_call_operand.vmem [shape: bf16[2,8,8,128], index: 4, kind: output, shape index: {}]  }
   0x1   :  { %s713_s17 = smov 0  }
   0x2 LB: > { %s26_s18 = sadd.s32 1, %s678_s16  ;;  %p540_p0 = scmp.ge.s32.totalorder %s682_s17, 1  ;;  %s682_s17 = sphi %s713_s17, %s14_s17   ;;  %s678_s16 = sphi %s711_s16, %s811_s16   ;;  %s674_s15 = sphi %s709_s15, %s810_s15  }
   0x3   : > { %p28_p1 = scmp.ge.s32.totalorder %s26_s18, 2  ;;  %p184_p2 = scmp.lt.s32.totalorder %s682_s17, 3 }
   0x5   : > { %s813_s18 = smov (%p28_p1, %s26_s18), 0  ;;  %p185_p3 = pnand %p540_p0, %p184_p2 }
   0x6   : > { %v347_v0 = vld [vmem:[%s808_s3] sm:$0xf] (!%p185_p3)  ;;  %vm361_vm0 = vcmask (!%p185_p3), 1043456   ;;  %p220_p4 = scmp.lt.s32.totalorder (!%p185_p3), %s674_s15, 1  ;;  %vm348_vm1 = vcmask (!%p185_p3), 64512  }
   0x7   : > { %188 = sbr.rel (%p185_p3) target bundleno = 260 (0x104), region = 36  ;;  %634 = vmatprep.subr.msk.bf16.mxu0 (!%p185_p3), %vm361_vm0, %v347_v0  ;;  %635 = vmatprep.subr.msk.bf16.mxu1 (!%p185_p3), %vm361_vm0, %v347_v0  ;;  %v363_v1 = vsel (!%p185_p3), %vm361_vm0, %v347_v0, 0  ;;  %v741_v2 = vld [vmem:[%s806_s1] ss:$0 sm:$0xff] (!%p185_p3) }
   0x8   : > { %623 = vmatpush3.bf16.msra.mxu0 (!%p185_p3), %v363_v1  ;;  %633 = vmatpush3.bf16.msra.mxu1 (!%p185_p3), %v363_v1  ;;  %v750_v11 = vld [vmem:[%s807_s2] ss:$0 sm:$0xff] (!%p185_p3) }
   0xe   : > { %s815_s15 = smov (!%p220_p4, %s674_s15), 1 }
   0xf   : > { %s553_s21 = sshll.u32 %s815_s15, 6  ;;  %s554_s29 = sshll.u32 %s815_s15, 5 }
  0x10   : > { %s736_s24 = scalar_lea.vmem %s805_s0, %s553_s21  ;;  %s238_s6 = scalar_lea.vmem %s809_s4, %s554_s29 }
  0x11   : > { %v556_v3 = vld [vmem:[%s736_s24] sm:$0xff]   ;;  %v607_v4 = vld [vmem:[%s736_s24 + $0x8] sm:$0xff]   ;;  %v608_v32 = vld [vmem:[%s736_s24 + $0x10] sm:$0xff]  }
  0x12   : > { %v610_v5 = vld [vmem:[%s736_s24 + $0x20] sm:$0xff]   ;;  %v557_v6 = vunpack.c.l.bf16 %v556_v3  ;;  %v558_v7 = vunpack.c.h.bf16 %v556_v3  ;;  %v561_v8 = vunpack.c.l.bf16 %v607_v4  ;;  %v562_v9 = vunpack.c.h.bf16 %v607_v4  ;;  %v611_v10 = vld [vmem:[%s736_s24 + $0x28] sm:$0xff]   ;;  %v609_v37 = vld [vmem:[%s736_s24 + $0x18] sm:$0xff]  }
  0x13   : > { %v573_v12 = vunpack.c.l.bf16 %v610_v5  ;;  %v574_v13 = vunpack.c.h.bf16 %v610_v5  ;;  %v577_v14 = vunpack.c.l.bf16 %v611_v10  ;;  %v578_v15 = vunpack.c.h.bf16 %v611_v10  ;;  %v612_v42 = vld [vmem:[%s736_s24 + $0x30] sm:$0xff]   ;;  %v613_v51 = vld [vmem:[%s736_s24 + $0x38] sm:$0xff]  }
  0x14   : > { %v281_v16 = vmul.f32 %v557_v6, %v741_v2  ;;  %v282_v17 = vmul.f32 %v561_v8, %v741_v2  ;;  %v311_v18 = vmul.f32 %v558_v7, %v741_v2  ;;  %v312_v19 = vmul.f32 %v562_v9, %v741_v2 }
  0x15   : > { %v285_v20 = vmul.f32 %v573_v12, %v741_v2  ;;  %v286_v21 = vmul.f32 %v577_v14, %v741_v2  ;;  %v315_v22 = vmul.f32 %v574_v13, %v741_v2  ;;  %v316_v23 = vmul.f32 %v578_v15, %v741_v2 }
  0x16   : > { %v295_v24 = vadd.f32 %v750_v11, %v281_v16  ;;  %v296_v25 = vadd.f32 %v750_v11, %v282_v17  ;;  %v319_v26 = vadd.f32 %v750_v11, %v311_v18  ;;  %v320_v27 = vadd.f32 %v750_v11, %v312_v19 }
  0x17   : > { %v299_v28 = vadd.f32 %v750_v11, %v285_v20  ;;  %v300_v29 = vadd.f32 %v750_v11, %v286_v21  ;;  %v323_v30 = vadd.f32 %v750_v11, %v315_v22  ;;  %v324_v31 = vadd.f32 %v750_v11, %v316_v23 }
  0x18   : > { %v303_v33 = vmax.f32 %v295_v24, 0.0  ;;  %v304_v34 = vmax.f32 %v296_v25, 0.0  ;;  %v327_v35 = vmax.f32 %v319_v26, 0.0  ;;  %v328_v36 = vmax.f32 %v320_v27, 0.0 }
  0x19   : > { %v307_v38 = vmax.f32 %v299_v28, 0.0  ;;  %v308_v39 = vmax.f32 %v300_v29, 0.0  ;;  %v331_v40 = vmax.f32 %v323_v30, 0.0  ;;  %v332_v41 = vmax.f32 %v324_v31, 0.0 }
  0x1a   : > { %v335_v43 = vadd.f32 %v327_v35, %v303_v33  ;;  %v336_v44 = vadd.f32 %v328_v36, %v304_v34  ;;  %v565_v45 = vunpack.c.l.bf16 %v608_v32  ;;  %v566_v46 = vunpack.c.h.bf16 %v608_v32 }
  0x1b   : > { %v339_v47 = vadd.f32 %v331_v40, %v307_v38  ;;  %v340_v48 = vadd.f32 %v332_v41, %v308_v39  ;;  %v569_v49 = vunpack.c.l.bf16 %v609_v37  ;;  %v570_v50 = vunpack.c.h.bf16 %v609_v37 }
  0x1c   : > { %v343_v52 = vpack.c.bf16 %v336_v44, %v335_v43  ;;  %v283_v53 = vmul.f32 %v565_v45, %v741_v2  ;;  %v313_v54 = vmul.f32 %v566_v46, %v741_v2  ;;  %v581_v55 = vunpack.c.l.bf16 %v612_v42 }
  0x1d   : > { %v345_v56 = vpack.c.bf16 %v340_v48, %v339_v47  ;;  %v284_v57 = vmul.f32 %v569_v49, %v741_v2  ;;  %v314_v58 = vmul.f32 %v570_v50, %v741_v2  ;;  %v582_v59 = vunpack.c.h.bf16 %v612_v42 }
  0x1e   : > { %624 = vmatprep.mubr.msk.bf16.mxu0 %vm348_vm1, %v343_v52  ;;  %v297_v60 = vadd.f32 %v750_v11, %v283_v53  ;;  %v321_v61 = vadd.f32 %v750_v11, %v313_v54  ;;  %v585_v62 = vunpack.c.l.bf16 %v613_v51  ;;  %v586_v63 = vunpack.c.h.bf16 %v613_v51 }
  0x1f   : > { %628 = vmatprep.mubr.msk.bf16.mxu1 %vm348_vm1, %v345_v56  ;;  %v298_v0 = vadd.f32 %v750_v11, %v284_v57  ;;  %v322_v1 = vadd.f32 %v750_v11, %v314_v58  ;;  %v287_v3 = vmul.f32 %v581_v55, %v741_v2  ;;  %v317_v4 = vmul.f32 %v582_v59, %v741_v2 }
  0x20   : > { %v305_v5 = vmax.f32 %v297_v60, 0.0  ;;  %v329_v6 = vmax.f32 %v321_v61, 0.0  ;;  %v288_v7 = vmul.f32 %v585_v62, %v741_v2  ;;  %v318_v8 = vmul.f32 %v586_v63, %v741_v2 }
  0x21   : > { %v306_v9 = vmax.f32 %v298_v0, 0.0  ;;  %v330_v10 = vmax.f32 %v322_v1, 0.0  ;;  %v301_v12 = vadd.f32 %v750_v11, %v287_v3  ;;  %v325_v13 = vadd.f32 %v750_v11, %v317_v4 }
  0x22   : > { %v337_v14 = vadd.f32 %v329_v6, %v305_v5  ;;  %v302_v15 = vadd.f32 %v750_v11, %v288_v7  ;;  %v326_v16 = vadd.f32 %v750_v11, %v318_v8 }
  0x23   : > { %v338_v17 = vadd.f32 %v330_v10, %v306_v9  ;;  %v309_v18 = vmax.f32 %v301_v12, 0.0  ;;  %v333_v19 = vmax.f32 %v325_v13, 0.0 }
  0x24   : > { %v310_v20 = vmax.f32 %v302_v15, 0.0  ;;  %v334_v21 = vmax.f32 %v326_v16, 0.0 }
  0x25   : > { %v344_v22 = vpack.c.bf16 %v338_v17, %v337_v14  ;;  %v341_v23 = vadd.f32 %v333_v19, %v309_v18 }
  0x26   : > { %v342_v2 = vadd.f32 %v334_v21, %v310_v20 }
  0x27   : > { %625 = vmatmul.mubr.msk.bf16.vlgmr.msra.gmra.mrb[0].mxu0 %vm348_vm1, %v344_v22 }
  0x28   : > { %v346_v24 = vpack.c.bf16 %v342_v2, %v341_v23 }
  0x2a   : > { %629 = vmatmul.mubr.msk.bf16.vlgmr.msra.gmra.mrb[0].mxu1 %vm348_vm1, %v346_v24 }
  0xfa   : > { %v626_v25 = vpop.f32.mrb[0].mxu0 }
  0xfb   : > { %v399_v26 = vpop.f32.mrb[1].mxu0 }
  0xfc   : > { %v627_v11 = vpop.f32.mrb[2].mxu0 }
  0xfd   : > { %v630_v27 = vpop.f32.mrb[0].mxu1  ;;  %v595_v28 = vpack.c.bf16 %v627_v11, %v626_v25  ;;  %v402_v29 = vpop.f32.mrb[3].mxu0 }
  0xfe   : > { %v415_v30 = vpop.f32.mrb[1].mxu1  ;;  %v590_v31 = vpack.c.bf16 %v402_v29, %v399_v26 }
  0xff   : > { %614 = vst [vmem:[%s238_s6 + $0x8] sm:$0xff] %v595_v28   ;;  %v631_v32 = vpop.f32.mrb[2].mxu1 }
 0x100   : > { %v605_v33 = vpack.c.bf16 %v631_v32, %v630_v27  ;;  %591 = vst [vmem:[%s238_s6] sm:$0xff] %v590_v31   ;;  %v418_v34 = vpop.f32.mrb[3].mxu1 }
 0x101   : > { %v600_v35 = vpack.c.bf16 %v418_v34, %v415_v30 }
 0x102   : > { %616 = vst [vmem:[%s238_s6 + $0x18] sm:$0xff] %v605_v33  }
 0x103   : > { %615 = vst [vmem:[%s238_s6 + $0x10] sm:$0xff] %v600_v35  }
 0x104 PF: > { %s14_s17 = sadd.s32 1, %s682_s17   ;;  %s810_s15 = smov %s678_s16 }
 0x105   : > { %p11_p5 = scmp.ge.s32.totalorder %s14_s17, 4   ;;  %s811_s16 = smov %s813_s18 }
 0x107   :  { %13 = sbr.rel (!%p11_p5) target bundleno = 2 (0x2), region = 66 }

</bundles_post_ra>
